<compile_context>
chip_gen: v7x
topology: tpu7x:2x2x1
jax: 0.10.0
libtpu: 0.0.40
codegen_flags: <defaults>
</compile_context>

<pallas_src>
import math

import jax
import jax.numpy as jnp
from jax.experimental import pallas as pl
from jax.experimental.pallas import tpu as pltpu


def _round_up(n, m):
    return ((n + m - 1) // m) * m


def decoder_kernel(x_ref, w1_ref, b1_ref, w2_ref, b2_ref, out_ref):
    # Layer 1 on the MXU (f32 operands, f32 accumulation); bias + ReLU on the VPU.
    h = jnp.dot(x_ref[...], w1_ref[...], preferred_element_type=jnp.float32)
    h = jnp.maximum(h + b1_ref[...], 0.0)
    # Layer 2 on the MXU, bias add on the VPU, lane-dense (Dout_p=128k) store.
    y = jnp.dot(h, w2_ref[...], preferred_element_type=jnp.float32)
    out_ref[...] = (y + b2_ref[...]).astype(out_ref.dtype)


def make_decoder(w1, b1, w2, b2, *, max_batch_block=1024):
    """Returns a jitted forward computing y = relu(x @ w1 + b1) @ w2 + b2.

    Weight/bias padding + layout prep happens ONCE here (hoisted out of the
    per-call path). Din is left unpadded; H and Dout are zero-padded to
    multiples of 128 for lane-dense VMEM tiles and unmasked output stores.
    """
    Din, H = w1.shape
    Dout = w2.shape[1]
    H_p = _round_up(H, 128)
    Dout_p = _round_up(Dout, 128)

    # Zero padding keeps the padded columns exactly zero through bias+ReLU+matmul.
    w1p = jnp.zeros((Din, H_p), jnp.float32).at[:, :H].set(w1.astype(jnp.float32))
    b1p = jnp.zeros((1, H_p), jnp.float32).at[:, :H].set(
        jnp.reshape(b1, (1, H)).astype(jnp.float32))
    w2p = jnp.zeros((H_p, Dout_p), jnp.float32).at[:H, :Dout].set(
        w2.astype(jnp.float32))
    b2p = jnp.zeros((1, Dout_p), jnp.float32).at[:, :Dout].set(
        jnp.reshape(b2, (1, Dout)).astype(jnp.float32))
    w1p, b1p, w2p, b2p = jax.device_put((w1p, b1p, w2p, b2p))

    weight_bytes = 4 * (w1p.size + b1p.size + w2p.size + b2p.size)

    @jax.jit
    def forward(x):
        B, din = x.shape
        assert din == Din
        x = x.astype(jnp.float32)

        # Single grid step whenever the whole batch fits one block: at these
        # sizes the fixed per-step grid overhead dominates the matmuls.
        B8 = _round_up(B, 8)
        bt = B8 if B8 <= max_batch_block else max_batch_block
        B_p = _round_up(B, bt)
        xp = x if B_p == B else jnp.zeros((B_p, Din), jnp.float32).at[:B].set(x)

        grid = (B_p // bt,)
        flops = 2 * B * (Din * H + H * Dout)
        bytes_accessed = 4 * (xp.size + B_p * Dout_p) + weight_bytes

        # VMEM budget: double-buffered x/out tiles + resident (double-buffered)
        # weights + slack.  Kept explicit so a scaled-up decoder still fits the
        # smaller 64 MiB VMEM on v7x.
        vmem_limit = int(min(
            2 * 4 * bt * (Din + Dout_p) + 2 * weight_bytes + (8 << 20),
            100 << 20))

        out_p = pl.pallas_call(
            decoder_kernel,
            out_shape=jax.ShapeDtypeStruct((B_p, Dout_p), jnp.float32),
            grid_spec=pltpu.PrefetchScalarGridSpec(
                num_scalar_prefetch=0,
                grid=grid,
                in_specs=[
                    # x marches over the batch; weights/biases use constant
                    # block indices -> fetched once, VMEM-resident across steps.
                    pl.BlockSpec((bt, Din), lambda i: (i, 0)),
                    pl.BlockSpec((Din, H_p), lambda i: (0, 0)),
                    pl.BlockSpec((1, H_p), lambda i: (0, 0)),
                    pl.BlockSpec((H_p, Dout_p), lambda i: (0, 0)),
                    pl.BlockSpec((1, Dout_p), lambda i: (0, 0)),
                ],
                out_specs=pl.BlockSpec((bt, Dout_p), lambda i: (i, 0)),
            ),
            compiler_params=pltpu.CompilerParams(
                dimension_semantics=("arbitrary",),
                vmem_limit_bytes=vmem_limit,
            ),
            cost_estimate=pl.CostEstimate(
                flops=flops, transcendentals=0, bytes_accessed=bytes_accessed),
        )(xp, w1p, b1p, w2p, b2p)

        # Only the Dout padding needs slicing off; no batch slice when B % bt == 0.
        out = out_p if Dout_p == Dout else out_p[:, :Dout]
        if B_p != B:
            out = out[:B]
        return out

    return forward


def xavier_uniform(key, fan_in, fan_out, gain):
    # Matches torch.nn.init.xavier_uniform_ for a Linear weight of shape
    # (fan_out, fan_in); generated directly as (fan_in, fan_out).
    bound = gain * math.sqrt(6.0 / (fan_in + fan_out))
    return jax.random.uniform(
        key, (fan_in, fan_out), dtype=jnp.float32, minval=-bound, maxval=bound)


if __name__ == "__main__":
    # decoder_template(input_dim=32, output_dim=64, hidden_size_rule=(48,))
    input_dim = 32
    hidden = 48
    output_dim = 64
    batch = 256  # multiple of 8 -> no batch pad, single grid step

    key = jax.random.PRNGKey(0)
    k_x, k_w1, k_w2 = jax.random.split(key, 3)

    x = jax.random.normal(k_x, (batch, input_dim), dtype=jnp.float32)

    # weights_init: Linear weights -> xavier_uniform(gain=0.5), biases -> 0
    w1 = xavier_uniform(k_w1, input_dim, hidden, gain=0.5)
    b1 = jnp.zeros((hidden,), dtype=jnp.float32)
    w2 = xavier_uniform(k_w2, hidden, output_dim, gain=0.5)
    b2 = jnp.zeros((output_dim,), dtype=jnp.float32)

    decoder = make_decoder(w1, b1, w2, b2)
    out = decoder(x)
    jax.block_until_ready(out)

    ref = jnp.maximum(x @ w1 + b1, 0.0) @ w2 + b2
    assert out.shape == (batch, output_dim)
    assert jnp.allclose(out, ref, atol=1e-2, rtol=1e-2), (
        float(jnp.max(jnp.abs(out - ref))))

    print("KERNEL_OK")
</pallas_src>

<mosaic_0001>
module attributes {stable_mosaic.version = 11 : i64} {
  func.func @decoder_kernel(%arg0: i32, %arg1: memref<256x32xf32, #tpu.memory_space<vmem>>, %arg2: memref<32x128xf32, #tpu.memory_space<vmem>>, %arg3: memref<1x128xf32, #tpu.memory_space<vmem>>, %arg4: memref<128x128xf32, #tpu.memory_space<vmem>>, %arg5: memref<1x128xf32, #tpu.memory_space<vmem>>, %arg6: memref<256x128xf32, #tpu.memory_space<vmem>>) attributes {dimension_semantics = [#tpu.dimension_semantics<arbitrary>], iteration_bounds = array<i64: 1>, scalar_prefetch = 0 : i64, scratch_operands = 0 : i64, tpu.core_type = #tpu.core_type<tc>, window_params = [{transform_indices = @transform_0, window_bounds = array<i64: 256, 32>}, {pipeline_mode = #tpu.pipeline_mode<synchronous>, transform_indices = @transform_1, window_bounds = array<i64: 32, 128>}, {pipeline_mode = #tpu.pipeline_mode<synchronous>, transform_indices = @transform_2, window_bounds = array<i64: 1, 128>}, {pipeline_mode = #tpu.pipeline_mode<synchronous>, transform_indices = @transform_3, window_bounds = array<i64: 128, 128>}, {pipeline_mode = #tpu.pipeline_mode<synchronous>, transform_indices = @transform_4, window_bounds = array<i64: 1, 128>}, {transform_indices = @transform_5, window_bounds = array<i64: 256, 128>}]} {
    %c0 = arith.constant 0 : index
    %c0_0 = arith.constant 0 : index
    %0 = vector.load %arg1[%c0, %c0_0] : memref<256x32xf32, #tpu.memory_space<vmem>>, vector<256x32xf32>
    %c0_1 = arith.constant 0 : index
    %c0_2 = arith.constant 0 : index
    %1 = vector.load %arg2[%c0_1, %c0_2] : memref<32x128xf32, #tpu.memory_space<vmem>>, vector<32x128xf32>
    %cst = arith.constant dense<0.000000e+00> : vector<256x128xf32>
    %2 = tpu.matmul %0, %1, %cst {dimension_numbers = #tpu.dot_dimension_numbers<[1], [0], [0], [1], [0, 0, 1, 1], [], []>} : vector<256x32xf32>, vector<32x128xf32>, vector<256x128xf32> -> vector<256x128xf32>
    %c0_3 = arith.constant 0 : index
    %c0_4 = arith.constant 0 : index
    %3 = vector.load %arg3[%c0_3, %c0_4] : memref<1x128xf32, #tpu.memory_space<vmem>>, vector<1x128xf32>
    %4 = vector.broadcast %3 : vector<1x128xf32> to vector<256x128xf32>
    %5 = arith.addf %2, %4 : vector<256x128xf32>
    %cst_5 = arith.constant 0.000000e+00 : f32
    %6 = vector.broadcast %cst_5 : f32 to vector<256x128xf32>
    %7 = arith.maximumf %5, %6 : vector<256x128xf32>
    %c0_6 = arith.constant 0 : index
    %c0_7 = arith.constant 0 : index
    %8 = vector.load %arg4[%c0_6, %c0_7] : memref<128x128xf32, #tpu.memory_space<vmem>>, vector<128x128xf32>
    %cst_8 = arith.constant dense<0.000000e+00> : vector<256x128xf32>
    %9 = tpu.matmul %7, %8, %cst_8 {dimension_numbers = #tpu.dot_dimension_numbers<[1], [0], [0], [1], [0, 0, 1, 1], [], []>} : vector<256x128xf32>, vector<128x128xf32>, vector<256x128xf32> -> vector<256x128xf32>
    %c0_9 = arith.constant 0 : index
    %c0_10 = arith.constant 0 : index
    %10 = vector.load %arg5[%c0_9, %c0_10] : memref<1x128xf32, #tpu.memory_space<vmem>>, vector<1x128xf32>
    %11 = vector.broadcast %10 : vector<1x128xf32> to vector<256x128xf32>
    %12 = arith.addf %9, %11 : vector<256x128xf32>
    %c0_11 = arith.constant 0 : index
    %c0_12 = arith.constant 0 : index
    %13 = vector.load %arg6[%c0_11, %c0_12] : memref<256x128xf32, #tpu.memory_space<vmem>>, vector<256x128xf32>
    tpu.vector_store %arg6[%c0_11, %c0_12], %12 {strides = array<i32>} : memref<256x128xf32, #tpu.memory_space<vmem>>, vector<256x128xf32>,
    return
  }
  func.func @transform_0(%arg0: i32) -> (i32, i32) {
    %c0_i32 = arith.constant 0 : i32
    %c0_i32_0 = arith.constant 0 : i32
    return %arg0, %c0_i32 : i32, i32
  }
  func.func @transform_1(%arg0: i32) -> (i32, i32) {
    %c0_i32 = arith.constant 0 : i32
    %c0_i32_0 = arith.constant 0 : i32
    %c0_i32_1 = arith.constant 0 : i32
    return %c0_i32, %c0_i32_0 : i32, i32
  }
  func.func @transform_2(%arg0: i32) -> (i32, i32) {
    %c0_i32 = arith.constant 0 : i32
    %c0_i32_0 = arith.constant 0 : i32
    %c0_i32_1 = arith.constant 0 : i32
    return %c0_i32, %c0_i32_0 : i32, i32
  }
  func.func @transform_3(%arg0: i32) -> (i32, i32) {
    %c0_i32 = arith.constant 0 : i32
    %c0_i32_0 = arith.constant 0 : i32
    %c0_i32_1 = arith.constant 0 : i32
    return %c0_i32, %c0_i32_0 : i32, i32
  }
  func.func @transform_4(%arg0: i32) -> (i32, i32) {
    %c0_i32 = arith.constant 0 : i32
    %c0_i32_0 = arith.constant 0 : i32
    %c0_i32_1 = arith.constant 0 : i32
    return %c0_i32, %c0_i32_0 : i32, i32
  }
  func.func @transform_5(%arg0: i32) -> (i32, i32) {
    %c0_i32 = arith.constant 0 : i32
    %c0_i32_0 = arith.constant 0 : i32
    return %arg0, %c0_i32 : i32, i32
  }
}

</mosaic_0001>

<bundles_post_ra>
// kernel: forward.1
= control target key start
LH: loop header
LB: loop body
LE: loop exit
PB: predicated region body
PF: predicated region fallthrough
CT: control target
= control target key end

     0   :  { %vm63_vm0 = vcmask 261120   ;;  %s1399_s1 = inlined_call_operand.vmem [shape: f32[32,128], index: 1, kind: input, shape index: {}]   ;;  %s1400_s0 = inlined_call_operand.vmem [shape: f32[256,32], index: 0, kind: input, shape index: {}]   ;;  %s1401_s3 = inlined_call_operand.vmem [shape: f32[128,128], index: 3, kind: input, shape index: {}]   ;;  %s1402_s2 = inlined_call_operand.vmem [shape: f32[1,128], index: 2, kind: input, shape index: {}, may-alias: {2,4}]   ;;  %s1403_s4 = inlined_call_operand.vmem [shape: f32[1,128], index: 4, kind: input, shape index: {}, may-alias: {2,4}]   ;;  %s1404_s5 = inlined_call_operand.vmem [shape: f32[256,128], index: 5, kind: output, shape index: {}]  }
   0x1   :  { %v52_v0 = vld [vmem:[%s1399_s1] sm:$0xff]  ;;  %v53_v1 = vld [vmem:[%s1399_s1 + $0x8] sm:$0xff]  ;;  %v54_v2 = vld [vmem:[%s1399_s1 + $0x10] sm:$0xff] }
   0x2   :  { %v955_v3 = vpack.c.bf16 %v53_v1, %v52_v0  ;;  %v55_v4 = vld [vmem:[%s1399_s1 + $0x18] sm:$0xff]  ;;  %v20_v5 = vld [vmem:[%s1400_s0] sm:$0xff]  ;;  %v21_v7 = vld [vmem:[%s1400_s0 + $0x8] sm:$0xff] }
   0x3   :  { %v959_v6 = vpack.c.bf16 %v55_v4, %v54_v2  ;;  %827 = vmatprep.mubr.msk.f32.mxu0 %vm63_vm0, %v20_v5  ;;  %v22_v8 = vld [vmem:[%s1400_s0 + $0x10] sm:$0xff]  ;;  %v23_v9 = vld [vmem:[%s1400_s0 + $0x18] sm:$0xff]  ;;  %v417_v10 = vld [vmem:[%s1401_s3] sm:$0xff] }
   0x4   :  { %956 = vmatprep.subr.bf16.mxu0 %v955_v3  ;;  %v418_v11 = vld [vmem:[%s1401_s3 + $0x8] sm:$0xff]  ;;  %v419_v12 = vld [vmem:[%s1401_s3 + $0x10] sm:$0xff]  ;;  %v24_v13 = vld [vmem:[%s1400_s0 + $0x20] sm:$0xff] }
   0x5   :  { %958 = vmatpush3.bf16.msra.mxu0 %v955_v3  ;;  %v963_v14 = vpack.c.bf16 %v418_v11, %v417_v10  ;;  %v420_v15 = vld [vmem:[%s1401_s3 + $0x18] sm:$0xff]  ;;  %v421_v17 = vld [vmem:[%s1401_s3 + $0x20] sm:$0xff]  ;;  %v422_v18 = vld [vmem:[%s1401_s3 + $0x28] sm:$0xff] }
   0x6   :  { %960 = vmatprep.subr.bf16.mxu0 %v959_v6  ;;  %v967_v16 = vpack.c.bf16 %v420_v15, %v419_v12  ;;  %v25_v19 = vld [vmem:[%s1400_s0 + $0x28] sm:$0xff]  ;;  %v26_v20 = vld [vmem:[%s1400_s0 + $0x30] sm:$0xff]  ;;  %v971_v21 = vpack.c.bf16 %v422_v18, %v421_v17  ;;  %v424_v23 = vld [vmem:[%s1401_s3 + $0x38] sm:$0xff] }
   0x7   :  { %995 = vmatprep.subr.bf16.mxu1 %v963_v14  ;;  %v423_v22 = vld [vmem:[%s1401_s3 + $0x30] sm:$0xff]  ;;  %v27_v24 = vld [vmem:[%s1400_s0 + $0x38] sm:$0xff]  ;;  %v28_v25 = vld [vmem:[%s1400_s0 + $0x40] sm:$0xff] }
   0x8   :  { %1003 = vmatpush3.bf16.msra.mxu1 %v963_v14  ;;  %v975_v26 = vpack.c.bf16 %v424_v23, %v423_v22  ;;  %v425_v27 = vld [vmem:[%s1401_s3 + $0x40] sm:$0xff]  ;;  %v426_v28 = vld [vmem:[%s1401_s3 + $0x48] sm:$0xff]  ;;  %v30_v30 = vld [vmem:[%s1400_s0 + $0x50] sm:$0xff] }
   0x9   :  { %962 = vmatpush3.bf16.msra.mxu0 %v959_v6  ;;  %996 = vmatprep.subr.bf16.mxu1 %v967_v16  ;;  %v29_v29 = vld [vmem:[%s1400_s0 + $0x48] sm:$0xff]  ;;  %v979_v31 = vpack.c.bf16 %v426_v28, %v425_v27  ;;  %v427_v32 = vld [vmem:[%s1401_s3 + $0x50] sm:$0xff]  ;;  %v428_v33 = vld [vmem:[%s1401_s3 + $0x58] sm:$0xff] }
   0xa   :  { %964 = vmatprep.subr.bf16.mxu0 %v963_v14  ;;  %v31_v34 = vld [vmem:[%s1400_s0 + $0x58] sm:$0xff]  ;;  %v32_v35 = vld [vmem:[%s1400_s0 + $0x60] sm:$0xff]  ;;  %v983_v36 = vpack.c.bf16 %v428_v33, %v427_v32  ;;  %v430_v38 = vld [vmem:[%s1401_s3 + $0x68] sm:$0xff] }
   0xb   :  { %v429_v37 = vld [vmem:[%s1401_s3 + $0x60] sm:$0xff]  ;;  %v33_v39 = vld [vmem:[%s1400_s0 + $0x68] sm:$0xff]  ;;  %v34_v40 = vld [vmem:[%s1400_s0 + $0x70] sm:$0xff] }
   0xc   :  { %828 = vmatmul.mubr.msk.f32.vlgmr.msra.gmra.mrb[0].mxu0 %vm63_vm0, %v21_v7  ;;  %1004 = vmatpush3.bf16.msra.mxu1 %v967_v16  ;;  %v987_v41 = vpack.c.bf16 %v430_v38, %v429_v37  ;;  %v35_v42 = vld [vmem:[%s1400_s0 + $0x78] sm:$0xff]  ;;  %v36_v43 = vld [vmem:[%s1400_s0 + $0x80] sm:$0xff]  ;;  %v37_v44 = vld [vmem:[%s1400_s0 + $0x88] sm:$0xff] }
   0xd   :  { %830 = vmatprep.mubr.msk.f32.mxu0 %vm63_vm0, %v22_v8  ;;  %966 = vmatpush3.bf16.msra.mxu0 %v963_v14  ;;  %v38_v45 = vld [vmem:[%s1400_s0 + $0x90] sm:$0xff]  ;;  %v39_v46 = vld [vmem:[%s1400_s0 + $0x98] sm:$0xff]  ;;  %v40_v47 = vld [vmem:[%s1400_s0 + $0xa0] sm:$0xff] }
   0xe   :  { %968 = vmatprep.subr.bf16.mxu0 %v967_v16  ;;  %997 = vmatprep.subr.bf16.mxu1 %v971_v21  ;;  %v41_v48 = vld [vmem:[%s1400_s0 + $0xa8] sm:$0xff]  ;;  %v42_v49 = vld [vmem:[%s1400_s0 + $0xb0] sm:$0xff]  ;;  %v43_v50 = vld [vmem:[%s1400_s0 + $0xb8] sm:$0xff] }
   0xf   :  { %v44_v51 = vld [vmem:[%s1400_s0 + $0xc0] sm:$0xff]  ;;  %v45_v52 = vld [vmem:[%s1400_s0 + $0xc8] sm:$0xff]  ;;  %v46_v53 = vld [vmem:[%s1400_s0 + $0xd0] sm:$0xff] }
  0x10   :  { %831 = vmatmul.mubr.msk.f32.gmra.mrb[2].mxu0 %vm63_vm0, %v23_v9  ;;  %1005 = vmatpush3.bf16.msra.mxu1 %v971_v21  ;;  %v47_v54 = vld [vmem:[%s1400_s0 + $0xd8] sm:$0xff]  ;;  %v48_v55 = vld [vmem:[%s1400_s0 + $0xe0] sm:$0xff]  ;;  %v49_v56 = vld [vmem:[%s1400_s0 + $0xe8] sm:$0xff] }
  0x11   :  { %833 = vmatprep.mubr.msk.f32.mxu0 %vm63_vm0, %v24_v13  ;;  %970 = vmatpush3.bf16.msra.mxu0 %v967_v16  ;;  %v50_v57 = vld [vmem:[%s1400_s0 + $0xf0] sm:$0xff]  ;;  %v51_v58 = vld [vmem:[%s1400_s0 + $0xf8] sm:$0xff]  ;;  %v1232_v62 = vld [vmem:[%s1402_s2] ss:$0 sm:$0xff] }
  0x12   :  { %972 = vmatprep.subr.bf16.mxu0 %v971_v21  ;;  %998 = vmatprep.subr.bf16.mxu1 %v975_v26  ;;  %v431_v59 = vld [vmem:[%s1401_s3 + $0x70] sm:$0xff]  ;;  %v432_v60 = vld [vmem:[%s1401_s3 + $0x78] sm:$0xff] }
  0x13   :  { %v991_v61 = vpack.c.bf16 %v432_v60, %v431_v59 }
  0x14   :  { %834 = vmatmul.mubr.msk.f32.gmra.mrb[4].mxu0 %vm63_vm0, %v25_v19  ;;  %1006 = vmatpush3.bf16.msra.mxu1 %v975_v26 }
  0x15   :  { %836 = vmatprep.mubr.msk.f32.mxu0 %vm63_vm0, %v26_v20  ;;  %974 = vmatpush3.bf16.msra.mxu0 %v971_v21 }
  0x16   :  { %976 = vmatprep.subr.bf16.mxu0 %v975_v26  ;;  %999 = vmatprep.subr.bf16.mxu1 %v979_v31 }
  0x18   :  { %837 = vmatmul.mubr.msk.f32.gmra.mrb[6].mxu0 %vm63_vm0, %v27_v24  ;;  %1007 = vmatpush3.bf16.msra.mxu1 %v979_v31 }
  0x19   :  { %839 = vmatprep.mubr.msk.f32.mxu0 %vm63_vm0, %v28_v25  ;;  %978 = vmatpush3.bf16.msra.mxu0 %v975_v26 }
  0x1a   :  { %980 = vmatprep.subr.bf16.mxu0 %v979_v31  ;;  %1000 = vmatprep.subr.bf16.mxu1 %v983_v36 }
  0x1c   :  { %840 = vmatmul.mubr.msk.f32.gmra.mrb[8].mxu0 %vm63_vm0, %v29_v29  ;;  %1008 = vmatpush3.bf16.msra.mxu1 %v983_v36 }
  0x1d   :  { %842 = vmatprep.mubr.msk.f32.mxu0 %vm63_vm0, %v30_v30  ;;  %982 = vmatpush3.bf16.msra.mxu0 %v979_v31 }
  0x1e   :  { %984 = vmatprep.subr.bf16.mxu0 %v983_v36  ;;  %1001 = vmatprep.subr.bf16.mxu1 %v987_v41 }
  0x20   :  { %843 = vmatmul.mubr.msk.f32.gmra.mrb[10].mxu0 %vm63_vm0, %v31_v34  ;;  %1009 = vmatpush3.bf16.msra.mxu1 %v987_v41 }
  0x21   :  { %845 = vmatprep.mubr.msk.f32.mxu0 %vm63_vm0, %v32_v35  ;;  %986 = vmatpush3.bf16.msra.mxu0 %v983_v36 }
  0x22   :  { %988 = vmatprep.subr.bf16.mxu0 %v987_v41  ;;  %1002 = vmatprep.subr.bf16.mxu1 %v991_v61 }
  0x24   :  { %846 = vmatmul.mubr.msk.f32.gmra.mrb[12].mxu0 %vm63_vm0, %v33_v39  ;;  %1010 = vmatpush3.bf16.msra.mxu1 %v991_v61 }
  0x25   :  { %848 = vmatprep.mubr.msk.f32.mxu0 %vm63_vm0, %v34_v40  ;;  %990 = vmatpush3.bf16.msra.mxu0 %v987_v41 }
  0x26   :  { %992 = vmatprep.subr.bf16.mxu0 %v991_v61 }
  0x28   :  { %849 = vmatmul.mubr.msk.f32.gmra.mrb[14].mxu0 %vm63_vm0, %v35_v42 }
  0x29   :  { %851 = vmatprep.mubr.msk.f32.mxu0 %vm63_vm0, %v36_v43  ;;  %994 = vmatpush3.bf16.msra.mxu0 %v991_v61 }
  0x2c   :  { %852 = vmatmul.mubr.msk.f32.gmra.mrb[16].mxu0 %vm63_vm0, %v37_v44 }
  0x2d   :  { %854 = vmatprep.mubr.msk.f32.mxu0 %vm63_vm0, %v38_v45 }
  0x30   :  { %855 = vmatmul.mubr.msk.f32.gmra.mrb[18].mxu0 %vm63_vm0, %v39_v46 }
  0x31   :  { %857 = vmatprep.mubr.msk.f32.mxu0 %vm63_vm0, %v40_v47 }
  0x34   :  { %858 = vmatmul.mubr.msk.f32.gmra.mrb[20].mxu0 %vm63_vm0, %v41_v48 }
  0x35   :  { %860 = vmatprep.mubr.msk.f32.mxu0 %vm63_vm0, %v42_v49 }
  0x38   :  { %861 = vmatmul.mubr.msk.f32.gmra.mrb[22].mxu0 %vm63_vm0, %v43_v50 }
  0x39   :  { %863 = vmatprep.mubr.msk.f32.mxu0 %vm63_vm0, %v44_v51 }
  0x3c   :  { %864 = vmatmul.mubr.msk.f32.gmra.mrb[24].mxu0 %vm63_vm0, %v45_v52 }
  0x3d   :  { %866 = vmatprep.mubr.msk.f32.mxu0 %vm63_vm0, %v46_v53 }
  0x40   :  { %867 = vmatmul.mubr.msk.f32.gmra.mrb[26].mxu0 %vm63_vm0, %v47_v54 }
  0x41   :  { %869 = vmatprep.mubr.msk.f32.mxu0 %vm63_vm0, %v48_v55 }
  0x44   :  { %870 = vmatmul.mubr.msk.f32.gmra.mrb[28].mxu0 %vm63_vm0, %v49_v56 }
  0x45   :  { %872 = vmatprep.mubr.msk.f32.mxu0 %vm63_vm0, %v50_v57 }
  0x48   :  { %873 = vmatmul.mubr.msk.f32.gmra.mrb[30].mxu0 %vm63_vm0, %v51_v58 }
  0xdf   :  { %v829_v63 = vpop.f32.mrb[0].mxu0 }
  0xe0   :  { %v232_v0 = vadd.f32 %v829_v63, %v1232_v62  ;;  %v226_v1 = vpop.f32.mrb[1].mxu0 }
  0xe1   :  { %v227_v2 = vadd.f32 %v1232_v62, %v226_v1 }
  0xe2   :  { %v386_v5 = vmax.f32 %v232_v0, 0.0 }
  0xe3   :  { %v385_v3 = vmax.f32 %v227_v2, 0.0  ;;  %v832_v4 = vpop.f32.mrb[2].mxu0 }
  0xe4   :  { %v242_v6 = vadd.f32 %v832_v4, %v1232_v62  ;;  %v236_v7 = vpop.f32.mrb[3].mxu0 }
  0xe5   :  { %v237_v8 = vadd.f32 %v1232_v62, %v236_v7  ;;  %907 = vmatprep.mubr.f32.mxu0 %v385_v3 }
  0xe6   :  { %908 = vmatmul.mubr.f32.vlgmr.msra.gmra.mrb[32].mxu0 %v386_v5  ;;  %v388_v11 = vmax.f32 %v242_v6, 0.0 }
  0xe7   :  { %v387_v9 = vmax.f32 %v237_v8, 0.0  ;;  %v835_v10 = vpop.f32.mrb[4].mxu0 }
  0xe8   :  { %v252_v12 = vadd.f32 %v835_v10, %v1232_v62  ;;  %v246_v13 = vpop.f32.mrb[5].mxu0 }
  0xe9   :  { %v247_v14 = vadd.f32 %v1232_v62, %v246_v13  ;;  %910 = vmatprep.mubr.f32.mxu0 %v387_v9 }
  0xea   :  { %911 = vmatmul.mubr.f32.gmra.mrb[34].mxu0 %v388_v11  ;;  %v390_v17 = vmax.f32 %v252_v12, 0.0 }
  0xeb   :  { %v389_v15 = vmax.f32 %v247_v14, 0.0  ;;  %v838_v16 = vpop.f32.mrb[6].mxu0 }
  0xec   :  { %v262_v18 = vadd.f32 %v838_v16, %v1232_v62  ;;  %v256_v19 = vpop.f32.mrb[7].mxu0 }
  0xed   :  { %913 = vmatprep.mubr.f32.mxu0 %v389_v15  ;;  %v257_v20 = vadd.f32 %v1232_v62, %v256_v19 }
  0xee   :  { %914 = vmatmul.mubr.f32.gmra.mrb[36].mxu0 %v390_v17  ;;  %v392_v23 = vmax.f32 %v262_v18, 0.0 }
  0xef   :  { %v841_v21 = vpop.f32.mrb[8].mxu0  ;;  %v391_v22 = vmax.f32 %v257_v20, 0.0 }
  0xf0   :  { %v272_v24 = vadd.f32 %v841_v21, %v1232_v62  ;;  %v266_v25 = vpop.f32.mrb[9].mxu0 }
  0xf1   :  { %v267_v26 = vadd.f32 %v1232_v62, %v266_v25  ;;  %916 = vmatprep.mubr.f32.mxu1 %v391_v22 }
  0xf2   :  { %917 = vmatmul.mubr.f32.vlgmr.msra.gmra.mrb[0].mxu1 %v392_v23  ;;  %v394_v29 = vmax.f32 %v272_v24, 0.0 }
  0xf3   :  { %v393_v27 = vmax.f32 %v267_v26, 0.0  ;;  %v844_v28 = vpop.f32.mrb[10].mxu0 }
  0xf4   :  { %v282_v30 = vadd.f32 %v844_v28, %v1232_v62  ;;  %v276_v31 = vpop.f32.mrb[11].mxu0 }
  0xf5   :  { %v277_v32 = vadd.f32 %v1232_v62, %v276_v31  ;;  %919 = vmatprep.mubr.f32.mxu1 %v393_v27 }
  0xf6   :  { %920 = vmatmul.mubr.f32.gmra.mrb[2].mxu1 %v394_v29  ;;  %v396_v35 = vmax.f32 %v282_v30, 0.0 }
  0xf7   :  { %v395_v33 = vmax.f32 %v277_v32, 0.0  ;;  %v847_v34 = vpop.f32.mrb[12].mxu0  ;;  %v1269_v32 = vld [vmem:[%s1403_s4] ss:$0 sm:$0xff] }
  0xf8   :  { %v292_v36 = vadd.f32 %v847_v34, %v1232_v62  ;;  %v286_v37 = vpop.f32.mrb[13].mxu0 }
  0xf9   :  { %v287_v38 = vadd.f32 %v1232_v62, %v286_v37  ;;  %922 = vmatprep.mubr.f32.mxu1 %v395_v33 }
  0xfa   :  { %923 = vmatmul.mubr.f32.gmra.mrb[4].mxu1 %v396_v35  ;;  %v398_v41 = vmax.f32 %v292_v36, 0.0 }
  0xfb   :  { %v397_v39 = vmax.f32 %v287_v38, 0.0  ;;  %v850_v40 = vpop.f32.mrb[14].mxu0 }
  0xfc   :  { %v302_v42 = vadd.f32 %v850_v40, %v1232_v62  ;;  %v296_v43 = vpop.f32.mrb[15].mxu0 }
  0xfd   :  { %v297_v44 = vadd.f32 %v1232_v62, %v296_v43  ;;  %925 = vmatprep.mubr.f32.mxu1 %v397_v39 }
  0xfe   :  { %926 = vmatmul.mubr.f32.gmra.mrb[6].mxu1 %v398_v41  ;;  %v400_v47 = vmax.f32 %v302_v42, 0.0 }
  0xff   :  { %v399_v45 = vmax.f32 %v297_v44, 0.0  ;;  %v853_v46 = vpop.f32.mrb[16].mxu0 }
 0x100   :  { %v312_v48 = vadd.f32 %v853_v46, %v1232_v62  ;;  %v306_v49 = vpop.f32.mrb[17].mxu0 }
 0x101   :  { %v307_v50 = vadd.f32 %v1232_v62, %v306_v49  ;;  %928 = vmatprep.mubr.f32.mxu1 %v399_v45 }
 0x102   :  { %929 = vmatmul.mubr.f32.gmra.mrb[8].mxu1 %v400_v47  ;;  %v402_v53 = vmax.f32 %v312_v48, 0.0 }
 0x103   :  { %v401_v51 = vmax.f32 %v307_v50, 0.0  ;;  %v856_v52 = vpop.f32.mrb[18].mxu0 }
 0x104   :  { %v322_v54 = vadd.f32 %v856_v52, %v1232_v62  ;;  %v316_v55 = vpop.f32.mrb[19].mxu0 }
 0x105   :  { %v317_v56 = vadd.f32 %v1232_v62, %v316_v55  ;;  %931 = vmatprep.mubr.f32.mxu1 %v401_v51 }
 0x106   :  { %932 = vmatmul.mubr.f32.gmra.mrb[10].mxu1 %v402_v53  ;;  %v404_v59 = vmax.f32 %v322_v54, 0.0 }
 0x107   :  { %v403_v57 = vmax.f32 %v317_v56, 0.0  ;;  %v859_v58 = vpop.f32.mrb[20].mxu0 }
 0x108   :  { %v332_v60 = vadd.f32 %v859_v58, %v1232_v62  ;;  %v326_v61 = vpop.f32.mrb[21].mxu0 }
 0x109   :  { %v327_v63 = vadd.f32 %v1232_v62, %v326_v61  ;;  %934 = vmatprep.mubr.f32.mxu1 %v403_v57 }
 0x10a   :  { %935 = vmatmul.mubr.f32.gmra.mrb[12].mxu1 %v404_v59  ;;  %v406_v2 = vmax.f32 %v332_v60, 0.0 }
 0x10b   :  { %v405_v0 = vmax.f32 %v327_v63, 0.0  ;;  %v862_v1 = vpop.f32.mrb[22].mxu0 }
 0x10c   :  { %v342_v3 = vadd.f32 %v862_v1, %v1232_v62  ;;  %v336_v4 = vpop.f32.mrb[23].mxu0 }
 0x10d   :  { %v337_v5 = vadd.f32 %v1232_v62, %v336_v4  ;;  %937 = vmatprep.mubr.f32.mxu1 %v405_v0 }
 0x10e   :  { %938 = vmatmul.mubr.f32.gmra.mrb[14].mxu1 %v406_v2  ;;  %v408_v8 = vmax.f32 %v342_v3, 0.0 }
 0x10f   :  { %v407_v6 = vmax.f32 %v337_v5, 0.0  ;;  %v865_v7 = vpop.f32.mrb[24].mxu0 }
 0x110   :  { %v352_v9 = vadd.f32 %v865_v7, %v1232_v62  ;;  %v346_v10 = vpop.f32.mrb[25].mxu0 }
 0x111   :  { %v347_v11 = vadd.f32 %v1232_v62, %v346_v10  ;;  %940 = vmatprep.mubr.f32.mxu1 %v407_v6 }
 0x112   :  { %941 = vmatmul.mubr.f32.gmra.mrb[16].mxu1 %v408_v8  ;;  %v410_v14 = vmax.f32 %v352_v9, 0.0 }
 0x113   :  { %v409_v12 = vmax.f32 %v347_v11, 0.0  ;;  %v868_v13 = vpop.f32.mrb[26].mxu0 }
 0x114   :  { %v362_v15 = vadd.f32 %v868_v13, %v1232_v62  ;;  %v356_v16 = vpop.f32.mrb[27].mxu0 }
 0x115   :  { %v357_v17 = vadd.f32 %v1232_v62, %v356_v16  ;;  %943 = vmatprep.mubr.f32.mxu1 %v409_v12 }
 0x116   :  { %944 = vmatmul.mubr.f32.gmra.mrb[18].mxu1 %v410_v14  ;;  %v412_v20 = vmax.f32 %v362_v15, 0.0 }
 0x117   :  { %v411_v18 = vmax.f32 %v357_v17, 0.0  ;;  %v871_v19 = vpop.f32.mrb[28].mxu0 }
 0x118   :  { %v372_v21 = vadd.f32 %v871_v19, %v1232_v62  ;;  %v366_v22 = vpop.f32.mrb[29].mxu0 }
 0x119   :  { %v367_v23 = vadd.f32 %v1232_v62, %v366_v22  ;;  %946 = vmatprep.mubr.f32.mxu1 %v411_v18 }
 0x11a   :  { %947 = vmatmul.mubr.f32.gmra.mrb[20].mxu1 %v412_v20  ;;  %v414_v26 = vmax.f32 %v372_v21, 0.0 }
 0x11b   :  { %v413_v24 = vmax.f32 %v367_v23, 0.0  ;;  %v874_v25 = vpop.f32.mrb[30].mxu0 }
 0x11c   :  { %v382_v27 = vadd.f32 %v874_v25, %v1232_v62  ;;  %v376_v28 = vpop.f32.mrb[31].mxu0 }
 0x11d   :  { %v377_v29 = vadd.f32 %v1232_v62, %v376_v28  ;;  %949 = vmatprep.mubr.f32.mxu1 %v413_v24 }
 0x11e   :  { %950 = vmatmul.mubr.f32.gmra.mrb[22].mxu1 %v414_v26  ;;  %v416_v31 = vmax.f32 %v382_v27, 0.0 }
 0x11f   :  { %v415_v30 = vmax.f32 %v377_v29, 0.0 }
 0x121   :  { %952 = vmatprep.mubr.f32.mxu1 %v415_v30 }
 0x122   :  { %953 = vmatmul.mubr.f32.gmra.mrb[24].mxu1 %v416_v31 }
 0x1b9   :  { %v909_v33 = vpop.f32.mrb[32].mxu0 }
 0x1ba   :  { %v512_v34 = vadd.f32 %v909_v33, %v1269_v32  ;;  %v506_v35 = vpop.f32.mrb[33].mxu0 }
 0x1bb   :  { %v507_v36 = vadd.f32 %v1269_v32, %v506_v35 }
 0x1bc   :  { %666 = vst [vmem:[%s1404_s5 + $0x8] sm:$0xff] %v512_v34 }
 0x1bd   :  { %665 = vst [vmem:[%s1404_s5] sm:$0xff] %v507_v36  ;;  %v912_v62 = vpop.f32.mrb[34].mxu0 }
 0x1be   :  { %v522_v37 = vadd.f32 %v912_v62, %v1269_v32  ;;  %v516_v38 = vpop.f32.mrb[35].mxu0 }
 0x1bf   :  { %v517_v39 = vadd.f32 %v1269_v32, %v516_v38 }
 0x1c0   :  { %668 = vst [vmem:[%s1404_s5 + $0x18] sm:$0xff] %v522_v37 }
 0x1c1   :  { %667 = vst [vmem:[%s1404_s5 + $0x10] sm:$0xff] %v517_v39  ;;  %v915_v40 = vpop.f32.mrb[36].mxu0 }
 0x1c2   :  { %v532_v41 = vadd.f32 %v915_v40, %v1269_v32  ;;  %v526_v42 = vpop.f32.mrb[37].mxu0 }
 0x1c3   :  { %v527_v43 = vadd.f32 %v1269_v32, %v526_v42 }
 0x1c4   :  { %670 = vst [vmem:[%s1404_s5 + $0x28] sm:$0xff] %v532_v41 }
 0x1c5   :  { %669 = vst [vmem:[%s1404_s5 + $0x20] sm:$0xff] %v527_v43  ;;  %v918_v44 = vpop.f32.mrb[0].mxu1 }
 0x1c6   :  { %v542_v45 = vadd.f32 %v918_v44, %v1269_v32  ;;  %v536_v46 = vpop.f32.mrb[1].mxu1 }
 0x1c7   :  { %v537_v47 = vadd.f32 %v1269_v32, %v536_v46 }
 0x1c8   :  { %672 = vst [vmem:[%s1404_s5 + $0x38] sm:$0xff] %v542_v45 }
 0x1c9   :  { %671 = vst [vmem:[%s1404_s5 + $0x30] sm:$0xff] %v537_v47  ;;  %v921_v48 = vpop.f32.mrb[2].mxu1 }
 0x1ca   :  { %v552_v49 = vadd.f32 %v921_v48, %v1269_v32  ;;  %v546_v50 = vpop.f32.mrb[3].mxu1 }
 0x1cb   :  { %v547_v51 = vadd.f32 %v1269_v32, %v546_v50 }
 0x1cc   :  { %674 = vst [vmem:[%s1404_s5 + $0x48] sm:$0xff] %v552_v49 }
 0x1cd   :  { %673 = vst [vmem:[%s1404_s5 + $0x40] sm:$0xff] %v547_v51  ;;  %v924_v52 = vpop.f32.mrb[4].mxu1 }
 0x1ce   :  { %v562_v53 = vadd.f32 %v924_v52, %v1269_v32  ;;  %v556_v54 = vpop.f32.mrb[5].mxu1 }
 0x1cf   :  { %v557_v55 = vadd.f32 %v1269_v32, %v556_v54 }
 0x1d0   :  { %676 = vst [vmem:[%s1404_s5 + $0x58] sm:$0xff] %v562_v53 }
 0x1d1   :  { %675 = vst [vmem:[%s1404_s5 + $0x50] sm:$0xff] %v557_v55  ;;  %v927_v56 = vpop.f32.mrb[6].mxu1 }
 0x1d2   :  { %v572_v57 = vadd.f32 %v927_v56, %v1269_v32  ;;  %v566_v58 = vpop.f32.mrb[7].mxu1 }
 0x1d3   :  { %v567_v59 = vadd.f32 %v1269_v32, %v566_v58 }
 0x1d4   :  { %678 = vst [vmem:[%s1404_s5 + $0x68] sm:$0xff] %v572_v57 }
 0x1d5   :  { %677 = vst [vmem:[%s1404_s5 + $0x60] sm:$0xff] %v567_v59  ;;  %v930_v60 = vpop.f32.mrb[8].mxu1 }
 0x1d6   :  { %v582_v61 = vadd.f32 %v930_v60, %v1269_v32  ;;  %v576_v63 = vpop.f32.mrb[9].mxu1 }
 0x1d7   :  { %v577_v0 = vadd.f32 %v1269_v32, %v576_v63 }
 0x1d8   :  { %680 = vst [vmem:[%s1404_s5 + $0x78] sm:$0xff] %v582_v61 }
 0x1d9   :  { %679 = vst [vmem:[%s1404_s5 + $0x70] sm:$0xff] %v577_v0  ;;  %v933_v1 = vpop.f32.mrb[10].mxu1 }
 0x1da   :  { %v592_v2 = vadd.f32 %v933_v1, %v1269_v32  ;;  %v586_v3 = vpop.f32.mrb[11].mxu1 }
 0x1db   :  { %v587_v4 = vadd.f32 %v1269_v32, %v586_v3 }
 0x1dc   :  { %682 = vst [vmem:[%s1404_s5 + $0x88] sm:$0xff] %v592_v2 }
 0x1dd   :  { %681 = vst [vmem:[%s1404_s5 + $0x80] sm:$0xff] %v587_v4  ;;  %v936_v5 = vpop.f32.mrb[12].mxu1 }
 0x1de   :  { %v602_v6 = vadd.f32 %v936_v5, %v1269_v32  ;;  %v596_v7 = vpop.f32.mrb[13].mxu1 }
 0x1df   :  { %v597_v8 = vadd.f32 %v1269_v32, %v596_v7 }
 0x1e0   :  { %684 = vst [vmem:[%s1404_s5 + $0x98] sm:$0xff] %v602_v6 }
 0x1e1   :  { %683 = vst [vmem:[%s1404_s5 + $0x90] sm:$0xff] %v597_v8  ;;  %v939_v9 = vpop.f32.mrb[14].mxu1 }
 0x1e2   :  { %v612_v10 = vadd.f32 %v939_v9, %v1269_v32  ;;  %v606_v11 = vpop.f32.mrb[15].mxu1 }
 0x1e3   :  { %v607_v12 = vadd.f32 %v1269_v32, %v606_v11 }
 0x1e4   :  { %686 = vst [vmem:[%s1404_s5 + $0xa8] sm:$0xff] %v612_v10 }
 0x1e5   :  { %685 = vst [vmem:[%s1404_s5 + $0xa0] sm:$0xff] %v607_v12  ;;  %v942_v13 = vpop.f32.mrb[16].mxu1 }
 0x1e6   :  { %v622_v14 = vadd.f32 %v942_v13, %v1269_v32  ;;  %v616_v15 = vpop.f32.mrb[17].mxu1 }
 0x1e7   :  { %v617_v16 = vadd.f32 %v1269_v32, %v616_v15 }
 0x1e8   :  { %688 = vst [vmem:[%s1404_s5 + $0xb8] sm:$0xff] %v622_v14 }
 0x1e9   :  { %687 = vst [vmem:[%s1404_s5 + $0xb0] sm:$0xff] %v617_v16  ;;  %v945_v17 = vpop.f32.mrb[18].mxu1 }
 0x1ea   :  { %v632_v18 = vadd.f32 %v945_v17, %v1269_v32  ;;  %v626_v19 = vpop.f32.mrb[19].mxu1 }
 0x1eb   :  { %v627_v20 = vadd.f32 %v1269_v32, %v626_v19 }
 0x1ec   :  { %690 = vst [vmem:[%s1404_s5 + $0xc8] sm:$0xff] %v632_v18 }
 0x1ed   :  { %689 = vst [vmem:[%s1404_s5 + $0xc0] sm:$0xff] %v627_v20  ;;  %v948_v21 = vpop.f32.mrb[20].mxu1 }
 0x1ee   :  { %v642_v22 = vadd.f32 %v948_v21, %v1269_v32  ;;  %v636_v23 = vpop.f32.mrb[21].mxu1 }
 0x1ef   :  { %v637_v24 = vadd.f32 %v1269_v32, %v636_v23 }
 0x1f0   :  { %692 = vst [vmem:[%s1404_s5 + $0xd8] sm:$0xff] %v642_v22 }
 0x1f1   :  { %691 = vst [vmem:[%s1404_s5 + $0xd0] sm:$0xff] %v637_v24  ;;  %v951_v25 = vpop.f32.mrb[22].mxu1 }
 0x1f2   :  { %v652_v26 = vadd.f32 %v951_v25, %v1269_v32  ;;  %v646_v27 = vpop.f32.mrb[23].mxu1 }
 0x1f3   :  { %v647_v28 = vadd.f32 %v1269_v32, %v646_v27 }
 0x1f4   :  { %694 = vst [vmem:[%s1404_s5 + $0xe8] sm:$0xff] %v652_v26 }
 0x1f5   :  { %693 = vst [vmem:[%s1404_s5 + $0xe0] sm:$0xff] %v647_v28  ;;  %v954_v29 = vpop.f32.mrb[24].mxu1 }
 0x1f6   :  { %v662_v30 = vadd.f32 %v954_v29, %v1269_v32  ;;  %v656_v31 = vpop.f32.mrb[25].mxu1 }
 0x1f7   :  { %v657_v33 = vadd.f32 %v1269_v32, %v656_v31 }
 0x1f8   :  { %696 = vst [vmem:[%s1404_s5 + $0xf8] sm:$0xff] %v662_v30 }
 0x1f9   :  { %695 = vst [vmem:[%s1404_s5 + $0xf0] sm:$0xff] %v657_v33 }

</bundles_post_ra>
